<compile_context>
chip_gen: v5e
topology: v5e:2x2
jax: 0.10.0
libtpu: 0.0.40
codegen_flags: <defaults>
</compile_context>

<pallas_src>
import functools
import re

import jax
import jax.numpy as jnp
from jax.experimental import pallas as pl
from jax.experimental.pallas import tpu as pltpu

EPS = 1e-5  # nn.InstanceNorm2d default


# ----------------------------------------------------------------------------
# Kernels
# ----------------------------------------------------------------------------
def _load_gamma_beta(gb_ref, c_idx, tc):
    """gb_ref is the full-C (C, 2) resident block; pick the (tc, 2) channel tile."""
    c_full = gb_ref.shape[0]
    if c_full == tc:                      # single channel tile -> no dynamic slice
        gb = gb_ref[...]
    else:                                 # tc is a multiple of the sublane granule
        c0 = pl.multiple_of(c_idx * tc, tc)
        gb = gb_ref[pl.ds(c0, tc), :]
    return gb[:, 0:1], gb[:, 1:2]         # gamma, beta: (tc, 1) f32


def adain_kernel(x_ref, gb_ref, o_ref):
    """Fast path: whole (tc, HW) feature tile resident in VMEM."""
    c = pl.program_id(1)
    tc, hw = x_ref.shape
    inv_hw = jnp.float32(1.0 / hw)

    xf = x_ref[...].astype(jnp.float32)                        # f32 statistics
    mean = jnp.sum(xf, axis=1, keepdims=True) * inv_hw         # (tc, 1)
    centered = xf - mean
    var = jnp.sum(centered * centered, axis=1, keepdims=True) * inv_hw  # biased

    gamma, beta = _load_gamma_beta(gb_ref, c, tc)
    scale = (1.0 + gamma) * jax.lax.rsqrt(var + EPS)           # (tc, 1)
    o_ref[...] = (centered * scale + beta).astype(o_ref.dtype)


def adain_hw_tiled_kernel(x_ref, gb_ref, o_ref, sum_ref, ssq_ref, *, total_hw):
    """Fallback for large spatial maps: two-pass over HW tiles.

    grid = (N, C//tc, 2, HW//thw); pass 0 accumulates sum / sum-of-squares into VMEM
    scratch, pass 1 finalizes the per-channel affine and writes every output tile.
    """
    c = pl.program_id(1)
    p = pl.program_id(2)
    h = pl.program_id(3)
    tc = x_ref.shape[0]

    @pl.when((p == 0) & (h == 0))
    def _init():
        sum_ref[...] = jnp.zeros_like(sum_ref)
        ssq_ref[...] = jnp.zeros_like(ssq_ref)

    xf = x_ref[...].astype(jnp.float32)

    @pl.when(p == 0)
    def _accumulate():
        sum_ref[...] = sum_ref[...] + jnp.sum(xf, axis=1, keepdims=True)
        ssq_ref[...] = ssq_ref[...] + jnp.sum(xf * xf, axis=1, keepdims=True)

    @pl.when(p == 1)
    def _finalize():
        inv_hw = jnp.float32(1.0 / total_hw)
        mean = sum_ref[...] * inv_hw
        var = jnp.maximum(ssq_ref[...] * inv_hw - mean * mean, 0.0)
        gamma, beta = _load_gamma_beta(gb_ref, c, tc)
        scale = (1.0 + gamma) * jax.lax.rsqrt(var + EPS)
        shift = beta - mean * scale
        o_ref[...] = (xf * scale + shift).astype(o_ref.dtype)


# ----------------------------------------------------------------------------
# Tiling / generation plumbing
# ----------------------------------------------------------------------------
def _tpu_generation():
    try:
        kind = jax.devices()[0].device_kind.lower()
        m = re.search(r"(\d+)", kind)
        return int(m.group(1)) if m else None
    except Exception:  # pragma: no cover - conservative fallback
        return None


def _per_gen_config(gen):
    """(target block bytes, vmem_limit_bytes). Footprint ~ 4x block (2-deep x/out)."""
    if gen is None or gen <= 5:
        return 2 * 1024 * 1024, 24 * 1024 * 1024   # v5e-class (16 MiB scoped default)
    if gen == 6:
        return 4 * 1024 * 1024, 48 * 1024 * 1024   # v6e: 128 MiB physical VMEM
    return 4 * 1024 * 1024, 32 * 1024 * 1024       # v7x: 64 MiB physical per TC


def _choose_tiling(C, HW, itemsize, target_bytes):
    """Return (channel_tile, hw_tile). hw_tile < HW triggers the two-pass kernel."""
    gran = max(8, 32 // itemsize)                  # f32:8, bf16:16, int8/fp8:32
    ch_cands = [d for d in range(gran, C + 1, gran) if C % d == 0] or [C]
    fitting = [d for d in ch_cands if d * HW * itemsize <= target_bytes]
    if fitting:
        return max(fitting), HW
    tc = min(ch_cands)
    if tc * HW * itemsize <= target_bytes:
        return tc, HW
    # Even the minimum channel tile is over budget -> tile HW (lane axis, x128).
    hw_cands = [d for d in range(128, HW + 1, 128) if HW % d == 0]
    hw_fit = [d for d in hw_cands if tc * d * itemsize <= target_bytes]
    if hw_fit:
        return tc, max(hw_fit)
    if hw_cands:
        return tc, min(hw_cands)
    return tc, HW  # no legal HW split; accept the oversized block


# ----------------------------------------------------------------------------
# Wrapper
# ----------------------------------------------------------------------------
def adaptive_instance_norm(x, s, w_fc, b_fc, *, block_bytes=None, vmem_limit_bytes=None):
    """x: (N, C, H, W), s: (N, style_dim), w_fc: (2C, style_dim), b_fc: (2C,)."""
    N, C, H, W = x.shape
    HW = H * W
    itemsize = jnp.dtype(x.dtype).itemsize

    gen = _tpu_generation()
    gen_block, gen_vmem = _per_gen_config(gen)
    target = gen_block if block_bytes is None else block_bytes
    vmem_limit = gen_vmem if vmem_limit_bytes is None else vmem_limit_bytes

    # Style FC hoisted out of the kernel: one batched XLA matmul for the whole batch.
    h = s @ w_fc.T + b_fc                                     # (N, 2C) == torch Linear
    gb = jnp.stack([h[:, :C], h[:, C:]], axis=-1).astype(jnp.float32)  # (N, C, 2)

    x2 = x.reshape(N, C, HW)
    tc, thw = _choose_tiling(C, HW, itemsize, target)
    nc = C // tc

    if thw == HW:
        # Fast path: one grid step per (sample, channel tile), single-pass kernel.
        if gen is not None and gen >= 7 and N >= 2:
            semantics = (pltpu.CORE_PARALLEL, pltpu.PARALLEL)   # dual-TC on v7x
        else:
            semantics = ("parallel", "parallel")
        out = pl.pallas_call(
            adain_kernel,
            out_shape=jax.ShapeDtypeStruct((N, C, HW), x.dtype),
            grid_spec=pltpu.PrefetchScalarGridSpec(
                num_scalar_prefetch=0,
                grid=(N, nc),
                in_specs=[
                    pl.BlockSpec((pl.Squeezed(), tc, HW), lambda n, c: (n, c, 0)),
                    # gamma/beta: full-C block, re-DMA'd only when the sample changes.
                    pl.BlockSpec((pl.Squeezed(), C, 2), lambda n, c: (n, 0, 0)),
                ],
                out_specs=pl.BlockSpec((pl.Squeezed(), tc, HW), lambda n, c: (n, c, 0)),
            ),
            compiler_params=pltpu.CompilerParams(
                dimension_semantics=semantics,
                vmem_limit_bytes=vmem_limit),
        )(x2, gb)
    else:
        # Large-HW fallback: two passes over HW tiles with VMEM stat scratch.
        nhw = HW // thw
        kern = functools.partial(adain_hw_tiled_kernel, total_hw=HW)
        out = pl.pallas_call(
            kern,
            out_shape=jax.ShapeDtypeStruct((N, C, HW), x.dtype),
            grid_spec=pltpu.PrefetchScalarGridSpec(
                num_scalar_prefetch=0,
                grid=(N, nc, 2, nhw),
                in_specs=[
                    pl.BlockSpec((pl.Squeezed(), tc, thw),
                                 lambda n, c, p, hh: (n, c, hh)),
                    pl.BlockSpec((pl.Squeezed(), C, 2),
                                 lambda n, c, p, hh: (n, 0, 0)),
                ],
                # Stay on block 0 during the accumulate pass (no garbage writeback);
                # pass 1 writes every output tile with the finalized affine.
                out_specs=pl.BlockSpec((pl.Squeezed(), tc, thw),
                                       lambda n, c, p, hh: (n, c, hh * p)),
                scratch_shapes=[pltpu.VMEM((tc, 1), jnp.float32),
                                pltpu.VMEM((tc, 1), jnp.float32)],
            ),
            compiler_params=pltpu.CompilerParams(
                dimension_semantics=("parallel", "parallel", "arbitrary", "arbitrary"),
                vmem_limit_bytes=vmem_limit),
        )(x2, gb)

    return out.reshape(N, C, H, W)


# ----------------------------------------------------------------------------
# Reference + self-test
# ----------------------------------------------------------------------------
def reference(x, s, w_fc, b_fc):
    N, C, H, W = x.shape
    h = s @ w_fc.T + b_fc
    gamma = h[:, :C].reshape(N, C, 1, 1)
    beta = h[:, C:].reshape(N, C, 1, 1)
    mean = jnp.mean(x, axis=(2, 3), keepdims=True)
    var = jnp.mean((x - mean) ** 2, axis=(2, 3), keepdims=True)
    xn = (x - mean) / jnp.sqrt(var + EPS)
    return (1.0 + gamma) * xn + beta


if __name__ == "__main__":
    N, C, H, W = 2, 4, 16, 16
    style_dim = 8

    key = jax.random.PRNGKey(0)
    kx, ks, kw, kb = jax.random.split(key, 4)

    x = jax.random.normal(kx, (N, C, H, W), dtype=jnp.float32)
    s = jax.random.normal(ks, (N, style_dim), dtype=jnp.float32)
    w_fc = 0.1 * jax.random.normal(kw, (2 * C, style_dim), dtype=jnp.float32)
    b_fc = 0.1 * jax.random.normal(kb, (2 * C,), dtype=jnp.float32)

    y_ref = reference(x, s, w_fc, b_fc)

    # Fast path (whole spatial map resident per channel tile).
    y = jax.block_until_ready(adaptive_instance_norm(x, s, w_fc, b_fc))
    assert y.shape == (N, C, H, W)
    assert jnp.allclose(y, y_ref, atol=1e-4, rtol=1e-4), "fast path mismatch"

    # Force the HW-tiled two-pass fallback (tiny block budget -> 128-lane HW tiles).
    y_t = jax.block_until_ready(
        adaptive_instance_norm(x, s, w_fc, b_fc, block_bytes=2048))
    assert jnp.allclose(y_t, y_ref, atol=1e-4, rtol=1e-4), "tiled path mismatch"

    print("KERNEL_OK")
</pallas_src>

<mosaic_0001>
module attributes {stable_mosaic.version = 11 : i64} {
  func.func @adain_kernel(%arg0: i32, %arg1: i32, %arg2: memref<1x4x256xf32, #tpu.memory_space<vmem>>, %arg3: memref<1x4x2xf32, #tpu.memory_space<vmem>>, %arg4: memref<1x4x256xf32, #tpu.memory_space<vmem>>) attributes {dimension_semantics = [#tpu.dimension_semantics<parallel>, #tpu.dimension_semantics<parallel>], iteration_bounds = array<i64: 2, 1>, scalar_prefetch = 0 : i64, scratch_operands = 0 : i64, tpu.core_type = #tpu.core_type<tc>, window_params = [{transform_indices = @transform_0, window_bounds = array<i64: 1, 4, 256>}, {transform_indices = @transform_1, window_bounds = array<i64: 1, 4, 2>}, {transform_indices = @transform_2, window_bounds = array<i64: 1, 4, 256>}]} {
    %c0 = arith.constant 0 : index
    %c0_0 = arith.constant 0 : index
    %c0_1 = arith.constant 0 : index
    %0 = vector.load %arg2[%c0, %c0_0, %c0_1] : memref<1x4x256xf32, #tpu.memory_space<vmem>>, vector<1x4x256xf32>
    %1 = vector.shape_cast %0 : vector<1x4x256xf32> to vector<4x256xf32>
    %cst = arith.constant dense<0.000000e+00> : vector<4xf32>
    %2 = vector.multi_reduction <add>, %1, %cst [1] : vector<4x256xf32> to vector<4xf32>
    %3 = vector.shape_cast %2 : vector<4xf32> to vector<4x1xf32>
    %cst_2 = arith.constant 3.906250e-03 : f32
    %4 = vector.broadcast %cst_2 : f32 to vector<4x1xf32>
    %5 = arith.mulf %3, %4 : vector<4x1xf32>
    %6 = vector.broadcast %5 : vector<4x1xf32> to vector<4x256xf32>
    %7 = arith.subf %1, %6 : vector<4x256xf32>
    %8 = arith.mulf %7, %7 : vector<4x256xf32>
    %cst_3 = arith.constant dense<0.000000e+00> : vector<4xf32>
    %9 = vector.multi_reduction <add>, %8, %cst_3 [1] : vector<4x256xf32> to vector<4xf32>
    %10 = vector.shape_cast %9 : vector<4xf32> to vector<4x1xf32>
    %cst_4 = arith.constant 3.906250e-03 : f32
    %11 = vector.broadcast %cst_4 : f32 to vector<4x1xf32>
    %12 = arith.mulf %10, %11 : vector<4x1xf32>
    %c0_5 = arith.constant 0 : index
    %c0_6 = arith.constant 0 : index
    %c0_7 = arith.constant 0 : index
    %13 = vector.load %arg3[%c0_5, %c0_6, %c0_7] : memref<1x4x2xf32, #tpu.memory_space<vmem>>, vector<1x4x2xf32>
    %14 = vector.shape_cast %13 : vector<1x4x2xf32> to vector<4x2xf32>
    %15 = vector.extract_strided_slice %14 {offsets = [0, 0], sizes = [4, 1], strides = [1, 1]} : vector<4x2xf32> to vector<4x1xf32>
    %16 = vector.extract_strided_slice %14 {offsets = [0, 1], sizes = [4, 1], strides = [1, 1]} : vector<4x2xf32> to vector<4x1xf32>
    %cst_8 = arith.constant 1.000000e+00 : f32
    %17 = vector.broadcast %cst_8 : f32 to vector<4x1xf32>
    %18 = arith.addf %17, %15 : vector<4x1xf32>
    %cst_9 = arith.constant 9.99999974E-6 : f32
    %19 = vector.broadcast %cst_9 : f32 to vector<4x1xf32>
    %20 = arith.addf %12, %19 : vector<4x1xf32>
    %21 = math.rsqrt %20 : vector<4x1xf32>
    %22 = arith.mulf %18, %21 : vector<4x1xf32>
    %23 = vector.broadcast %22 : vector<4x1xf32> to vector<4x256xf32>
    %24 = arith.mulf %7, %23 : vector<4x256xf32>
    %25 = vector.broadcast %16 : vector<4x1xf32> to vector<4x256xf32>
    %26 = arith.addf %24, %25 : vector<4x256xf32>
    %c0_10 = arith.constant 0 : index
    %c0_11 = arith.constant 0 : index
    %c0_12 = arith.constant 0 : index
    %27 = vector.load %arg4[%c0_10, %c0_11, %c0_12] : memref<1x4x256xf32, #tpu.memory_space<vmem>>, vector<1x4x256xf32>
    %28 = vector.shape_cast %27 : vector<1x4x256xf32> to vector<4x256xf32>
    %29 = vector.shape_cast %26 : vector<4x256xf32> to vector<1x4x256xf32>
    tpu.vector_store %arg4[%c0_10, %c0_11, %c0_12], %29 {strides = array<i32>} : memref<1x4x256xf32, #tpu.memory_space<vmem>>, vector<1x4x256xf32>,
    return
  }
  func.func @transform_0(%arg0: i32, %arg1: i32) -> (i32, i32, i32) {
    %c0_i32 = arith.constant 0 : i32
    %c0_i32_0 = arith.constant 0 : i32
    return %arg0, %arg1, %c0_i32 : i32, i32, i32
  }
  func.func @transform_1(%arg0: i32, %arg1: i32) -> (i32, i32, i32) {
    %c0_i32 = arith.constant 0 : i32
    %c0_i32_0 = arith.constant 0 : i32
    %c0_i32_1 = arith.constant 0 : i32
    return %arg0, %c0_i32, %c0_i32_0 : i32, i32, i32
  }
  func.func @transform_2(%arg0: i32, %arg1: i32) -> (i32, i32, i32) {
    %c0_i32 = arith.constant 0 : i32
    %c0_i32_0 = arith.constant 0 : i32
    return %arg0, %arg1, %c0_i32 : i32, i32, i32
  }
}

</mosaic_0001>

<bundles_post_ra>
// kernel: tpu_custom_call.1
= control target key start
LH: loop header
LB: loop body
LE: loop exit
PB: predicated region body
PF: predicated region fallthrough
CT: control target
= control target key end

     0   :  { %7 = vsyncpa [#allocation3], 0  ;;  %s734_s0 = inlined_call_operand.hbm [shape: f32[2,4,256], index: 0, kind: input, shape index: {}]   ;;  %s735_s1 = inlined_call_operand.vmem [shape: f32[2,4,2], index: 1, kind: input, shape index: {}]   ;;  %s736_s2 = inlined_call_operand.hbm [shape: f32[2,4,256], index: 2, kind: output, shape index: {}]  }
   0x1   :  { %9 = vsyncpa [#allocation3 + $0x1], 0 }
   0x2   :  { %10 = vsyncpa [#allocation4], 0 }
   0x3   :  { %12 = vsyncpa [#allocation4 + $0x1], 0  ;;  %s601_s9 = smov 0   ;;  %s603_s10 = smov 0  }
   0x4   :  { %s605_s11 = smov 0   ;;  %s607_s12 = smov 0  }
   0x5   :  { %s609_s13 = smov 0   ;;  %s611_s14 = smov 0  }
   0x6 LB: > { %s381_s15 = sadd.s32 4294967295, %s581_s14   ;;  %s382_s16 = sadd.s32 4294967294, %s581_s14   ;;  %s581_s14 = sphi %s611_s14, %s18_s14   ;;  %s577_s13 = sphi %s609_s13, %s745_s13   ;;  %s573_s12 = sphi %s607_s12, %s744_s12   ;;  %s569_s11 = sphi %s605_s11, %s743_s11   ;;  %s565_s10 = sphi %s603_s10, %s742_s10   ;;  %s561_s9 = sphi %s601_s9, %s741_s9  }
   0x7   : > { %s30_s17 = sadd.s32 1, %s577_s13  ;;  %s39_s18 = sadd.s32 1, %s569_s11 }
   0x8   : > { %p32_p0 = scmp.ge.s32.totalorder %s30_s17, 2  ;;  %p46_p1 = scmp.ne.s32.totalorder %s569_s11, %s565_s10 }
   0x9   : > { %p47_p2 = scmp.eq.s32.totalorder %s581_s14, 0  ;;  %p52_p3 = scmp.ne.s32.totalorder %s565_s10, %s561_s9 }
   0xa   : > { %s747_s17 = smov (%p32_p0, %s30_s17), 0  ;;  %p53_p5 = scmp.eq.s32.totalorder %s381_s15, 0 }
   0xb   : > { %p642_p4 = por %p47_p2, %p46_p1  ;;  %s34_s20 = ssub.s32 %s577_s13, %s747_s17 }
   0xc   : > { %p104_p6 = scmp.eq.s32.totalorder %s381_s15, 1  ;;  %p37_p7 = scmp.eq.s32.totalorder %s34_s20, 0 }
   0xd   : > { %p648_p8 = por %p53_p5, %p52_p3  ;;  %p110_p10 = scmp.eq.s32.totalorder %s382_s16, 1 }
   0xe   : > { %p652_p9 = por %p104_p6, %p46_p1  ;;  %p384_p12 = scmp.ge.s32.totalorder %s581_s14, 2 }
   0xf   : > { %s657_s23 = scalar_select %p37_p7, %s569_s11, %s39_s18  }
  0x10   : > { %p659_p11 = por %p110_p10, %p52_p3  ;;  %p411_p13 = scmp.lt.s32.totalorder %s581_s14, 2 }
  0x11   : > { %s130_s25 = sand.u32 1, %s569_s11   ;;  %s397_s27 = sshll.u32 %s577_s13, 3 }
  0x12   : > { %s385_s26 = sshll.u32 %s130_s25, 3  ;;  %s141_s30 = scalar_lea.hbm %s734_s0, %s397_s27 }
  0x13   : > { %s134_s3 = scalar_lea.vmem [#allocation2], %s385_s26  ;;  %s143_s5 = sshll.u32 %s141_s30, 4  ;;  %s144_s5 = int_to_ptr.hbm [resolvable:$true] %s143_s5 }
  0x14   : > { %s145_s4 = sshll.u32 %s134_s3, 4  ;;  %p404_p0 = pnand %p411_p13, %p642_p4  ;;  %s146_s4 = int_to_ptr.vmem [resolvable:$true] %s145_s4 }
  0x15   : > { %p388_p1 = scmp.ge.s32.totalorder %s581_s14, 1  ;;  %p157_p2 = scmp.lt.s32.totalorder %s581_s14, 3 }
  0x16   : > { %s131_s6 = scalar_lea.sflag [#allocation3], %s130_s25 }
  0x17   : > { %406 = dma.hbm_to_vmem [thread:$0]  (!%p404_p0), %s144_s5, 128, %s146_s4, %s131_s6  }
  0x18   : > { %p158_p3 = pnand %p388_p1, %p157_p2 }
  0x19   : > { %s675_s7 = sand.u32 (!%p158_p3), 1, %s565_s10  }
  0x1a   : > { %161 = sbr.rel (%p158_p3) target bundleno = 450 (0x1c2), region = 28  ;;  %s389_s8 = sshll.u32 (!%p158_p3), %s675_s7, 3 }
  0x1b   : > { %s164_s15 = scalar_lea.sflag (!%p158_p3), [#allocation3], %s675_s7  ;;  %s167_s16 = scalar_lea.vmem (!%p158_p3), [#allocation2], %s389_s8 }
  0x1f   : > { %552 = dma.done.wait (%p648_p8), %s164_s15, 128  }
  0x20   : > { %554 = vsyncadd (%p648_p8), %s164_s15, 4294967168  ;;  %v197_v0 = vld [vmem:[%s167_s16] sm:$0xff]  ;;  %vm204_vm0 = vcmask 1043456   ;;  %v583_v6 = vmov 839922192   ;;  %v584_v19 = vmov 0  }
  0x21   : > { %199 = vst [vmem:[#allocation1] ss:$2 sm:$0xff] %v197_v0  ;;  %v213_v7 = vunpack.c.l.s4 %v583_v6  ;;  %464 = vset.pattern.permute.xlu1 %v584_v19  ;;  %v585_v20 = vmov 1   ;;  %p193_p4 = scmp.lt.s32.totalorder %s573_s12, 1  ;;  %s398_s26 = sshll.u32 %s573_s12, 3 }
  0x22   : > { %466 = vset.pattern.permute.xlu0 %v585_v20  ;;  %s280_s29 = scalar_lea.hbm %s736_s2, %s398_s26  ;;  %s192_s30 = scalar_lea.vmem [#allocation5], %s389_s8 }
  0x23   : > { %v214_v8 = vunpack.c.0.s8 %v213_v7  ;;  %s194_s18 = scalar_select %p193_p4, %s573_s12, 1 }
  0x24   : > { %s282_s3 = sshll.u32 %s192_s30, 4  ;;  %s284_s4 = sshll.u32 %s280_s29, 4  ;;  %s283_s3 = int_to_ptr.vmem [resolvable:$true] %s282_s3  ;;  %s285_s4 = int_to_ptr.hbm [resolvable:$true] %s284_s4 }
  0x25   : > { %s391_s19 = sshll.u32 %s194_s18, 2  ;;  %s267_s5 = scalar_lea.sflag [#allocation4], %s675_s7 }
  0x26   : > { %s196_s25 = scalar_lea.vmem %s735_s1, %s391_s19  ;;  %s513_s6 = sshra.s32 %s285_s4, 4  ;;  %s514_s6 = int_to_ptr.hbm [resolvable:$true] %s513_s6 }
  0x27   : > { %v231_v28 = vld [vmem:[%s196_s25] sm:$0xf]  ;;  %s515_s12 = scalar_lea.hbm %s514_s6, 8  ;;  %s519_s8 = scalar_lea.hbm %s736_s2, 16 }
  0x28   : > { %v200_v1 = vld.sshfl [vmem:[#allocation1] sm:$0xff pattern:$0x75316420]  ;;  %v201_v2 = vld.sshfl [vmem:[#allocation1 + $0x8] sm:$0xff pattern:$0x75316420]  ;;  %p516_p5 = scmp.ne.s32.totalorder %s514_s6, %s515_s12  ;;  %p520_p8 = scmp.lt.s32.totalorder %s514_s6, %s736_s2 }
  0x29   : > { %v205_v3 = vsel %vm204_vm0, %v200_v1, 0.0  ;;  %v206_v4 = vsel %vm204_vm0, %v201_v2, 0.0  ;;  %v232_v30 = vadd.f32 1.0, %v231_v28  ;;  %p521_p10 = scmp.lt.s32.totalorder %s519_s8, %s515_s12 }
  0x2a   : > { %v207_v5 = vadd.f32 %v206_v4, %v205_v3  ;;  %p517_p6 = pnand %p516_p5, %p652_p9 }
  0x2b   : > { %p522_p13 = por %p521_p10, %p520_p8 }
  0x2c   : > { %208 = vadd.xlane.f32.xlu0 %v207_v5  ;;  %p518_p7 = pneg %p517_p6 }
  0x2e   : > { %p523_p0 = pnand %p522_p13, %p518_p7 }
  0x9f   : > { %v209_v9 = vpop.xlane.xlu0 %208 }
  0xa0   : > { %v210_v10 = vmul.f32 0.00390625, %v209_v9 }
  0xa2   : > { %v215_v11 = vperm.slane %v210_v10, %v214_v8 }
  0xa4   : > { %v217_v12 = vsub.f32 %v197_v0, %v215_v11 }
  0xa6   : > { %v218_v13 = vmul.f32 %v217_v12, %v217_v12 }
  0xa8   : > { %220 = vst [vmem:[#allocation1] ss:$2 sm:$0xff] %v218_v13 }
  0xaf   : > { %v221_v14 = vld.sshfl [vmem:[#allocation1] sm:$0xff pattern:$0x75316420]  ;;  %v222_v15 = vld.sshfl [vmem:[#allocation1 + $0x8] sm:$0xff pattern:$0x75316420] }
  0xb0   : > { %v225_v16 = vsel %vm204_vm0, %v221_v14, 0.0  ;;  %v226_v17 = vsel %vm204_vm0, %v222_v15, 0.0 }
  0xb1   : > { %v227_v18 = vadd.f32 %v226_v17, %v225_v16 }
  0xb3   : > { %228 = vadd.xlane.f32.xlu0 %v227_v18 }
 0x126   : > { %v229_v21 = vpop.xlane.xlu0 %228 }
 0x127   : > { %v230_v22 = vmul.f32 0.00390625, %v229_v21 }
 0x129   : > { %v233_v23 = vadd.f32 1e-05, %v230_v22 }
 0x12b   : > { %467 = vrsqrt.f32 %v233_v23  ;;  %vm240_vm2 = vweird.f32 %v233_v23 }
 0x131   : > { %v468_v24 = vpop.eup %467 }
 0x132   : > { %v235_v25 = vmul.f32 %v468_v24, %v233_v23  ;;  %vm241_vm1 = vweird.f32 %v468_v24 }
 0x133   : > { %vm242_vm3 = vmor %vm240_vm2, %vm241_vm1 }
 0x134   : > { %v236_v26 = vmul.f32 %v468_v24, %v235_v25 }
 0x136   : > { %v237_v27 = vmul.f32 0.5, %v236_v26 }
 0x138   : > { %v238_v29 = vsub.f32 1.5, %v237_v27 }
 0x13a   : > { %v239_v31 = vmul.f32 %v468_v24, %v238_v29 }
 0x13c   : > { %v243_v32 = vsel %vm242_vm3, %v468_v24, %v239_v31 }
 0x13d   : > { %v244_v33 = vmul.f32 %v243_v32, %v232_v30 }
 0x13f   : > { %247 = vperm.xlu1 %464, %v244_v33  }
 0x147   : > { %465 = vset.pattern.permute.xlu1 %v585_v20 }
 0x148   : > { %257 = vperm.xlu1 %465, %v231_v28  }
 0x1b1   : > { %v248_v34 = vpop.permute.xlu1 %247 }
 0x1b2   : > { %v252_v35 = vperm.slane %v248_v34, %v214_v8 }
 0x1b4   : > { %v254_v37 = vmul.f32 %v252_v35, %v217_v12 }
 0x1ba   : > { %v258_v36 = vpop.permute.xlu1 %257 }
 0x1bb   : > { %v262_v38 = vperm.slane %v258_v36, %v214_v8 }
 0x1bd   : > { %v264_v39 = vadd.f32 %v262_v38, %v254_v37 }
 0x1bf   : > { %265 = vst [vmem:[%s192_s30] sm:$0xff] %v264_v39 }
 0x1c0   : > { %526 = shalt.err (!%p523_p0)
}
 0x1c1   : > { %401 = dma.vmem_to_hbm [thread:$0]  (%p652_p9), %s283_s3, 128, %s285_s4, %s267_s5  }
 0x1c2 PF: > { %s296_s7 = sand.u32 1, %s561_s9   ;;  %p408_p1 = pnand %p384_p12, %p659_p11 }
 0x1c3   : > { %s297_s20 = scalar_lea.sflag [#allocation4], %s296_s7 }
 0x1c4   : > { %p409_p2 = pneg %p408_p1 }
 0x1c6   : > { %556 = dma.done.wait (%p409_p2), %s297_s20, 128  }
 0x1c7   : > { %558 = vsyncadd (%p409_p2), %s297_s20, 4294967168  ;;  %s18_s14 = sadd.s32 1, %s581_s14   ;;  %s741_s9 = smov %s565_s10 }
 0x1c8   : > { %p15_p3 = scmp.ge.s32.totalorder %s18_s14, 4   ;;  %s742_s10 = smov %s569_s11 }
 0x1c9   : > { %s743_s11 = smov %s657_s23  ;;  %s744_s12 = smov %s577_s13 }
 0x1ca   : > { %s745_s13 = smov %s747_s17  ;;  %17 = sbr.rel (!%p15_p3) target bundleno = 6 (0x6), region = 76 }
 0x1cf   :  { %303 = vsyncpa [#allocation3], 1 }
 0x1d0   :  { %305 = vsyncpa [#allocation3 + $0x1], 1 }
 0x1d1   :  { %306 = vsyncpa [#allocation4], 1 }
 0x1d2   :  { %308 = vsyncpa [#allocation4 + $0x1], 1 }

</bundles_post_ra>
